<compile_context>
chip_gen: v6e
topology: v6e:2x2x1
jax: 0.10.0
libtpu: 0.0.40
codegen_flags: <defaults>
</compile_context>

<pallas_src>
import functools

import jax
import jax.numpy as jnp
from jax import lax
from jax.experimental import pallas as pl
from jax.experimental.pallas import tpu as pltpu


def _round_up(x, m):
    return ((x + m - 1) // m) * m


def _osl_brier_kernel(x_ref, t_ref, loss_ref, acc_ref, *,
                      n_valid, block_n, tiles_per_core):
    core = pl.program_id(0)   # "parallel" axis (TensorCore split on v7x)
    i = pl.program_id(1)      # "arbitrary" axis (row-tile reduction)

    @pl.when(i == 0)
    def _init():
        acc_ref[...] = jnp.zeros_like(acc_ref)

    # Global (unclamped) tile index of this step -- used only for row validity.
    tile = core * tiles_per_core + i
    row0 = tile * block_n

    x = x_ref[...].astype(jnp.float32)   # (block_n, C)
    t = t_ref[...].astype(jnp.float32)

    # Rows outside [0, N) (partial last tile / clamped surplus tiles) may hold
    # garbage (possibly NaN/Inf).  Sanitizing them to x=0, t=0 makes both D
    # and p uniform 1/C, so their contribution is exactly zero -- no
    # output-side row mask needed and no NaN can reach the accumulator.
    row_ids = row0 + lax.broadcasted_iota(jnp.int32, (x.shape[0], 1), 0)
    row_valid = row_ids < n_valid
    x = jnp.where(row_valid, x, 0.0)
    t = jnp.where(row_valid, t, 0.0)

    # Softmax over the class (lane) axis; one reciprocal per row.
    m = jnp.max(x, axis=1, keepdims=True)
    e = jnp.exp(x - m)
    s = jnp.sum(e, axis=1, keepdims=True)
    p = e * (1.0 / s)

    # hardmax(targets * p): indicator of the row max, normalized by tie count.
    a = t * p
    amax = jnp.max(a, axis=1, keepdims=True)
    tie = (a == amax).astype(jnp.float32)
    cnt = jnp.sum(tie, axis=1, keepdims=True)
    d = tie * (1.0 / cnt)

    diff = d - p
    # Fold rows into the lane-vector accumulator (VPU adds + one small
    # in-vreg sublane fold); the full cross-lane reduction happens only once
    # per core, in the finalize branch below.
    acc_ref[...] += jnp.sum(diff * diff, axis=0, keepdims=True)

    @pl.when(i == tiles_per_core - 1)
    def _finalize():
        total = jnp.sum(acc_ref[...], axis=1, keepdims=True) * 0.5   # (1, 1)
        loss_ref[...] = total.reshape(1, 1, 1)


def osl_brier_loss(inputs, targets, *, block_n=None, num_cores=2):
    n, c = inputs.shape
    assert targets.shape == (n, c)

    itemsize = inputs.dtype.itemsize + targets.dtype.itemsize

    # Generation-aware VMEM budget (v7x has only 64 MiB per TensorCore).
    try:
        vmem_cap = pltpu.get_tpu_info().vmem_capacity_bytes
    except Exception:
        vmem_cap = 128 * 1024 * 1024
    vmem_limit = min((vmem_cap * 3) // 4, 96 * 1024 * 1024)

    # Size the row tile so 2 operands x 2 pipeline buffers use about a third
    # of the limit, leaving headroom for in-kernel f32 temporaries.
    c_vmem = _round_up(c, 128)   # lane padding inside VMEM
    if block_n is None:
        budget = vmem_limit // 3
        block_n = max(8, budget // (2 * c_vmem * itemsize))
        block_n = min(block_n, 8192)
    if block_n >= n:
        block_n = n                              # full-dim block (rule-exempt)
    else:
        block_n = max(8, (block_n // 8) * 8)     # sublane-aligned tile

    total_tiles = pl.cdiv(n, block_n)
    tiles_per_core = pl.cdiv(total_tiles, num_cores)
    max_tile = total_tiles - 1

    def in_map(core, i):
        # Surplus tiles of the last core are clamped to the last real tile;
        # the kernel masks all of their rows so they contribute exactly zero.
        return (jnp.minimum(core * tiles_per_core + i, max_tile), 0)

    kernel = functools.partial(
        _osl_brier_kernel,
        n_valid=n, block_n=block_n, tiles_per_core=tiles_per_core)

    cost = pl.CostEstimate(
        flops=12 * n * c,
        transcendentals=n * c,
        bytes_accessed=n * c * itemsize + num_cores * 4,
    )

    partials = pl.pallas_call(
        kernel,
        out_shape=jax.ShapeDtypeStruct((num_cores, 1, 1), jnp.float32),
        grid=(num_cores, tiles_per_core),
        in_specs=[
            pl.BlockSpec((block_n, c), in_map),
            pl.BlockSpec((block_n, c), in_map),
        ],
        out_specs=pl.BlockSpec((1, 1, 1), lambda core, i: (core, 0, 0)),
        scratch_shapes=[pltpu.VMEM((1, c), jnp.float32)],
        compiler_params=pltpu.CompilerParams(
            dimension_semantics=("parallel", "arbitrary"),
            vmem_limit_bytes=vmem_limit,
        ),
        cost_estimate=cost,
    )(inputs, targets)

    # Sum the per-core partial losses (each already scaled by 0.5 in-kernel).
    return jnp.sum(partials)


def osl_brier_loss_ref(inputs, targets):
    # Pure-JAX reference mirroring the PyTorch forward literally.
    p = jax.nn.softmax(inputs.astype(jnp.float32), axis=1)
    a = targets.astype(jnp.float32) * p
    dmask = (a == jnp.max(a, axis=1, keepdims=True)).astype(jnp.float32)
    d = dmask / jnp.sum(dmask, axis=1, keepdims=True)
    return jnp.sum((d - p) ** 2) / 2.0


if __name__ == "__main__":
    key = jax.random.PRNGKey(0)
    k1, k2 = jax.random.split(key)

    # N=50 rows of C=10 classes.  With block_n=8 this exercises multi-step
    # accumulation, a partially-valid last tile and the clamped surplus tile
    # of the second "core"; the default (auto) tile exercises the
    # one-tile-per-core path with a full-dim (non-multiple-of-8) block.
    N, C = 50, 10
    inputs = jax.random.normal(k1, (N, C), dtype=jnp.float32)
    labels = jax.random.randint(k2, (N,), 0, C)
    targets = jax.nn.one_hot(labels, C, dtype=jnp.float32)

    ref = osl_brier_loss_ref(inputs, targets)

    loss_small = jax.block_until_ready(osl_brier_loss(inputs, targets, block_n=8))
    loss_auto = jax.block_until_ready(osl_brier_loss(inputs, targets))

    assert jnp.allclose(loss_small, ref, rtol=1e-4, atol=1e-4), (loss_small, ref)
    assert jnp.allclose(loss_auto, ref, rtol=1e-4, atol=1e-4), (loss_auto, ref)
    print("KERNEL_OK")
</pallas_src>

<mosaic_0001>
module attributes {stable_mosaic.version = 11 : i64} {
  func.func @_osl_brier_kernel(%arg0: i32, %arg1: i32, %arg2: memref<8x10xf32, #tpu.memory_space<vmem>>, %arg3: memref<8x10xf32, #tpu.memory_space<vmem>>, %arg4: memref<1x1x1xf32, #tpu.memory_space<vmem>>, %arg5: memref<1x10xf32, #tpu.memory_space<vmem>>) attributes {dimension_semantics = [#tpu.dimension_semantics<parallel>, #tpu.dimension_semantics<arbitrary>], iteration_bounds = array<i64: 2, 4>, scalar_prefetch = 0 : i64, scratch_operands = 1 : i64, tpu.core_type = #tpu.core_type<tc>, window_params = [{transform_indices = @transform_0, window_bounds = array<i64: 8, 10>}, {transform_indices = @transform_1, window_bounds = array<i64: 8, 10>}, {transform_indices = @transform_2, window_bounds = array<i64: 1, 1, 1>}]} {
    %c0_i32 = arith.constant 0 : i32
    %0 = arith.cmpi eq, %arg1, %c0_i32 : i32
    %1 = arith.extui %0 : i1 to i32
    %c0_i32_0 = arith.constant 0 : i32
    %2 = arith.cmpi ne, %1, %c0_i32_0 : i32
    scf.if %2 {
      %cst_17 = arith.constant 0.000000e+00 : f32
      %55 = vector.broadcast %cst_17 : f32 to vector<1x10xf32>
      %c0_18 = arith.constant 0 : index
      %c0_19 = arith.constant 0 : index
      %56 = vector.load %arg5[%c0_18, %c0_19] : memref<1x10xf32, #tpu.memory_space<vmem>>, vector<1x10xf32>
      tpu.vector_store %arg5[%c0_18, %c0_19], %55 {strides = array<i32>} : memref<1x10xf32, #tpu.memory_space<vmem>>, vector<1x10xf32>,
    } else {
    }
    %c4_i32 = arith.constant 4 : i32
    %3 = arith.muli %arg0, %c4_i32 : i32
    %4 = arith.addi %3, %arg1 : i32
    %c8_i32 = arith.constant 8 : i32
    %5 = arith.muli %4, %c8_i32 : i32
    %c0 = arith.constant 0 : index
    %c0_1 = arith.constant 0 : index
    %6 = vector.load %arg2[%c0, %c0_1] : memref<8x10xf32, #tpu.memory_space<vmem>>, vector<8x10xf32>
    %c0_2 = arith.constant 0 : index
    %c0_3 = arith.constant 0 : index
    %7 = vector.load %arg3[%c0_2, %c0_3] : memref<8x10xf32, #tpu.memory_space<vmem>>, vector<8x10xf32>
    %8 = tpu.iota {dimensions = array<i32: 0>} : vector<8x1xi32>
    %9 = vector.broadcast %5 : i32 to vector<8x1xi32>
    %10 = arith.addi %9, %8 : vector<8x1xi32>
    %c50_i32 = arith.constant 50 : i32
    %11 = vector.broadcast %c50_i32 : i32 to vector<8x1xi32>
    %12 = arith.cmpi slt, %10, %11 : vector<8x1xi32>
    %cst = arith.constant 0.000000e+00 : f32
    %13 = vector.shape_cast %12 : vector<8x1xi1> to vector<8x1xi1>
    %14 = vector.broadcast %13 : vector<8x1xi1> to vector<8x10xi1>
    %15 = vector.broadcast %cst : f32 to vector<8x10xf32>
    %16 = arith.select %14, %6, %15 : vector<8x10xi1>, vector<8x10xf32>
    %cst_4 = arith.constant 0.000000e+00 : f32
    %17 = vector.shape_cast %12 : vector<8x1xi1> to vector<8x1xi1>
    %18 = vector.broadcast %17 : vector<8x1xi1> to vector<8x10xi1>
    %19 = vector.broadcast %cst_4 : f32 to vector<8x10xf32>
    %20 = arith.select %18, %7, %19 : vector<8x10xi1>, vector<8x10xf32>
    %cst_5 = arith.constant dense<0xFF800000> : vector<8xf32>
    %21 = vector.multi_reduction <maximumf>, %16, %cst_5 [1] : vector<8x10xf32> to vector<8xf32>
    %22 = vector.shape_cast %21 : vector<8xf32> to vector<8x1xf32>
    %23 = vector.broadcast %22 : vector<8x1xf32> to vector<8x10xf32>
    %24 = arith.subf %16, %23 : vector<8x10xf32>
    %25 = math.exp %24 : vector<8x10xf32>
    %cst_6 = arith.constant dense<0.000000e+00> : vector<8xf32>
    %26 = vector.multi_reduction <add>, %25, %cst_6 [1] : vector<8x10xf32> to vector<8xf32>
    %27 = vector.shape_cast %26 : vector<8xf32> to vector<8x1xf32>
    %cst_7 = arith.constant 1.000000e+00 : f32
    %28 = vector.broadcast %cst_7 : f32 to vector<8x1xf32>
    %29 = arith.divf %28, %27 : vector<8x1xf32>
    %30 = vector.broadcast %29 : vector<8x1xf32> to vector<8x10xf32>
    %31 = arith.mulf %25, %30 : vector<8x10xf32>
    %32 = arith.mulf %20, %31 : vector<8x10xf32>
    %cst_8 = arith.constant dense<0xFF800000> : vector<8xf32>
    %33 = vector.multi_reduction <maximumf>, %32, %cst_8 [1] : vector<8x10xf32> to vector<8xf32>
    %34 = vector.shape_cast %33 : vector<8xf32> to vector<8x1xf32>
    %35 = vector.broadcast %34 : vector<8x1xf32> to vector<8x10xf32>
    %36 = arith.cmpf oeq, %32, %35 : vector<8x10xf32>
    %37 = arith.extui %36 : vector<8x10xi1> to vector<8x10xi32>
    %38 = arith.sitofp %37 : vector<8x10xi32> to vector<8x10xf32>
    %cst_9 = arith.constant dense<0.000000e+00> : vector<8xf32>
    %39 = vector.multi_reduction <add>, %38, %cst_9 [1] : vector<8x10xf32> to vector<8xf32>
    %40 = vector.shape_cast %39 : vector<8xf32> to vector<8x1xf32>
    %cst_10 = arith.constant 1.000000e+00 : f32
    %41 = vector.broadcast %cst_10 : f32 to vector<8x1xf32>
    %42 = arith.divf %41, %40 : vector<8x1xf32>
    %43 = vector.broadcast %42 : vector<8x1xf32> to vector<8x10xf32>
    %44 = arith.mulf %38, %43 : vector<8x10xf32>
    %45 = arith.subf %44, %31 : vector<8x10xf32>
    %c0_11 = arith.constant 0 : index
    %c0_12 = arith.constant 0 : index
    %46 = vector.load %arg5[%c0_11, %c0_12] : memref<1x10xf32, #tpu.memory_space<vmem>>, vector<1x10xf32>
    %47 = arith.mulf %45, %45 : vector<8x10xf32>
    %cst_13 = arith.constant dense<0.000000e+00> : vector<10xf32>
    %48 = vector.multi_reduction <add>, %47, %cst_13 [0] : vector<8x10xf32> to vector<10xf32>
    %49 = vector.shape_cast %48 : vector<10xf32> to vector<1x10xf32>
    %50 = arith.addf %46, %49 : vector<1x10xf32>
    %c0_14 = arith.constant 0 : index
    %c0_15 = arith.constant 0 : index
    %51 = vector.load %arg5[%c0_14, %c0_15] : memref<1x10xf32, #tpu.memory_space<vmem>>, vector<1x10xf32>
    tpu.vector_store %arg5[%c0_14, %c0_15], %50 {strides = array<i32>} : memref<1x10xf32, #tpu.memory_space<vmem>>, vector<1x10xf32>,
    %c3_i32 = arith.constant 3 : i32
    %52 = arith.cmpi eq, %arg1, %c3_i32 : i32
    %53 = arith.extui %52 : i1 to i32
    %c0_i32_16 = arith.constant 0 : i32
    %54 = arith.cmpi ne, %53, %c0_i32_16 : i32
    scf.if %54 {
      %c0_17 = arith.constant 0 : index
      %c0_18 = arith.constant 0 : index
      %55 = vector.load %arg5[%c0_17, %c0_18] : memref<1x10xf32, #tpu.memory_space<vmem>>, vector<1x10xf32>
      %cst_19 = arith.constant dense<0.000000e+00> : vector<1xf32>
      %56 = vector.multi_reduction <add>, %55, %cst_19 [1] : vector<1x10xf32> to vector<1xf32>
      %57 = vector.shape_cast %56 : vector<1xf32> to vector<1x1xf32>
      %cst_20 = arith.constant 5.000000e-01 : f32
      %58 = vector.broadcast %cst_20 : f32 to vector<1x1xf32>
      %59 = arith.mulf %57, %58 : vector<1x1xf32>
      %60 = vector.shape_cast %59 : vector<1x1xf32> to vector<1x1x1xf32>
      %c0_21 = arith.constant 0 : index
      %c0_22 = arith.constant 0 : index
      %c0_23 = arith.constant 0 : index
      %61 = vector.load %arg4[%c0_21, %c0_22, %c0_23] : memref<1x1x1xf32, #tpu.memory_space<vmem>>, vector<1x1x1xf32>
      tpu.vector_store %arg4[%c0_21, %c0_22, %c0_23], %60 {strides = array<i32>} : memref<1x1x1xf32, #tpu.memory_space<vmem>>, vector<1x1x1xf32>,
    } else {
    }
    return
  }
  func.func @transform_0(%arg0: i32, %arg1: i32) -> (i32, i32) {
    %c4_i32 = arith.constant 4 : i32
    %0 = arith.muli %arg0, %c4_i32 : i32
    %1 = arith.addi %0, %arg1 : i32
    %c6_i32 = arith.constant 6 : i32
    %2 = arith.minsi %1, %c6_i32 : i32
    %c0_i32 = arith.constant 0 : i32
    %c0_i32_0 = arith.constant 0 : i32
    return %2, %c0_i32 : i32, i32
  }
  func.func @transform_1(%arg0: i32, %arg1: i32) -> (i32, i32) {
    %c4_i32 = arith.constant 4 : i32
    %0 = arith.muli %arg0, %c4_i32 : i32
    %1 = arith.addi %0, %arg1 : i32
    %c6_i32 = arith.constant 6 : i32
    %2 = arith.minsi %1, %c6_i32 : i32
    %c0_i32 = arith.constant 0 : i32
    %c0_i32_0 = arith.constant 0 : i32
    return %2, %c0_i32 : i32, i32
  }
  func.func @transform_2(%arg0: i32, %arg1: i32) -> (i32, i32, i32) {
    %c0_i32 = arith.constant 0 : i32
    %c0_i32_0 = arith.constant 0 : i32
    %c0_i32_1 = arith.constant 0 : i32
    return %arg0, %c0_i32, %c0_i32_0 : i32, i32, i32
  }
}

</mosaic_0001>

<bundles_post_ra>
// kernel: tpu_custom_call.1
= control target key start
LH: loop header
LB: loop body
LE: loop exit
PB: predicated region body
PF: predicated region fallthrough
CT: control target
= control target key end

     0   :  { %s493_s9 = smov 0   ;;  %s495_s10 = smov 0   ;;  %s565_s0 = inlined_call_operand.vmem [shape: f32[50,10], index: 0, kind: input, shape index: {}]   ;;  %s566_s1 = inlined_call_operand.vmem [shape: f32[50,10], index: 1, kind: input, shape index: {}]   ;;  %s567_s2 = inlined_call_operand.vmem [shape: f32[2,1,1], index: 2, kind: output, shape index: {}]  }
   0x1   :  { %s497_s11 = smov 0   ;;  %s499_s12 = smov 0  }
   0x2   :  { %s501_s13 = smov 0  }
   0x3 LB: > { %s21_s14 = sadd.s32 1, %s466_s11  ;;  %s24_s15 = sadd.s32 1, %s470_s12  ;;  %s474_s13 = sphi %s501_s13, %s12_s13   ;;  %s470_s12 = sphi %s499_s12, %s571_s12   ;;  %s466_s11 = sphi %s497_s11, %s570_s11   ;;  %s462_s10 = sphi %s495_s10, %s569_s10   ;;  %s458_s9 = sphi %s493_s9, %s568_s9  }
   0x4   : > { %p22_p0 = scmp.ge.s32.totalorder %s21_s14, 4  ;;  %p370_p1 = scmp.ge.s32.totalorder %s474_s13, 1 }
   0x5   : > { %p164_p2 = scmp.lt.s32.totalorder %s474_s13, 9 }
   0x6   : > { %s573_s14 = smov (%p22_p0, %s21_s14), 0  ;;  %s575_s15 = smov (!%p22_p0, %s24_s15), %s470_s12 }
   0x7   : > { %p165_p3 = pnand %p370_p1, %p164_p2  ;;  %p26_p4 = scmp.ge.s32.totalorder %s575_s15, 2 }
   0x8   : > { %s371_s16 = sshll.u32 (!%p165_p3), %s462_s10, 2  ;;  %p219_p5 = scmp.lt.s32.totalorder (!%p165_p3), %s462_s10, 1 }
   0x9   : > { %s577_s15 = smov (%p26_p4, %s575_s15), 0  ;;  %168 = sbr.rel (%p165_p3) target bundleno = 810 (0x32a), region = 28 }
   0xa   : > { %s196_s17 = sadd.s32 (!%p165_p3), %s458_s9, %s371_s16  ;;  %p381_p7 = scmp.ne.s32.totalorder (!%p165_p3), %s458_s9, 0 }
   0xb   : > { %p197_p6 = scmp.lt.s32.totalorder (!%p165_p3), %s196_s17, 6 }
   0xe   : > { %s579_s10 = smov (!%p219_p5, %s462_s10), 1 }
   0xf   : > { %s198_s18 = scalar_select %p197_p6, %s196_s17, 6 }
  0x10   : > { %s221_s21 = scalar_lea.vmem %s567_s2, %s579_s10  ;;  %225 = sbr.rel (%p381_p7) target bundleno = 23 (0x17), region = 32 }
  0x11   : > { %s581_s18 = smov (!%p197_p6, %s198_s18), 6 }
  0x12   : > { %s375_s22 = sshll.u32 %s581_s18, 3 }
  0x13   : > { %s202_s25 = scalar_lea.vmem %s565_s0, %s375_s22  ;;  %s214_s28 = scalar_lea.vmem %s566_s1, %s375_s22 }
  0x15   : > { %vm226_vm0 = vcmask 73728   ;;  %v476_v0 = vmov 0.0  }
  0x16   : > { %227 = vst.msk [vmem:[#allocation2] sm:$0x1] %vm226_vm0, %v476_v0 }
  0x17 PF: > { %s383_s29 = sshll.u32 %s196_s17, 3  ;;  %v233_v1 = vlaneseq  ;;  %v231_v4 = vld [vmem:[%s202_s25] sm:$0xff]  ;;  %vm242_vm1 = vcmask 80896   ;;  %v477_v21 = vmov 0.0   ;;  %vm279_vm4 = vcmask 73728   ;;  %p385_p8 = scmp.ne.s32.totalorder %s458_s9, 3 }
  0x18   : > { %v235_v2 = vstv %s383_s29  ;;  %v232_v14 = vld [vmem:[%s214_s28] sm:$0xff] }
  0x19   : > { %v234_v3 = vshrl.u32 %v233_v1, 7 }
  0x1b   : > { %v236_v5 = vadd.s32 %v235_v2, %v234_v3 }
  0x1d   : > { %vm237_vm2 = vcmp.lt.s32.totalorder %v236_v5, 50  ;;  %v269_v35 = vld [vmem:[#allocation2] sm:$0x1] }
  0x1e   : > { %v240_v6 = vsel %vm237_vm2, %v231_v4, 0.0  ;;  %v241_v16 = vsel %vm237_vm2, %v232_v14, 0.0 }
  0x1f   : > { %v243_v7 = vsel %vm242_vm1, %v240_v6, -inf }
  0x20   : > { %244 = vmax.xlane.f32.xlu0 %v243_v7 }
  0xa9   : > { %v245_v8 = vpop.xlane.xlu0 %244 }
  0xaa   : > { %v246_v9 = vsub.f32 %v240_v6, %v245_v8 }
  0xac   : > { %v247_v10 = vmul.f32 1.442695, %v246_v9 }
  0xae   : > { %430 = vpow2.f32 %v247_v10 }
  0xbb   : > { %v431_v11 = vpop.eup %430 }
  0xbc   : > { %v249_v12 = vsel %vm242_vm1, %v431_v11, 0.0 }
  0xbd   : > { %250 = vadd.xlane.f32.xlu0 %v249_v12 }
 0x146   : > { %v251_v13 = vpop.xlane.xlu0 %250 }
 0x147   : > { %432 = vrcp.f32 %v251_v13 }
 0x154   : > { %v433_v15 = vpop.eup %432 }
 0x155   : > { %v254_v17 = vmul.f32 %v433_v15, %v431_v11 }
 0x157   : > { %v255_v18 = vmul.f32 %v254_v17, %v241_v16 }
 0x159   : > { %v256_v19 = vsel %vm242_vm1, %v255_v18, -inf }
 0x15a   : > { %257 = vmax.xlane.f32.xlu1 %v256_v19 }
 0x1e3   : > { %v258_v20 = vpop.xlane.xlu1 %257 }
 0x1e4   : > { %vm259_vm3 = vcmp.eq.f32.partialorder %v255_v18, %v258_v20 }
 0x1e5   : > { %v384_v22 = vsel %vm259_vm3, 1.0, %v477_v21 }
 0x1e6   : > { %v262_v23 = vsel %vm242_vm1, %v384_v22, 0.0 }
 0x1e7   : > { %263 = vadd.xlane.f32.xlu1 %v262_v23 }
 0x270   : > { %v264_v24 = vpop.xlane.xlu1 %263 }
 0x271   : > { %434 = vrcp.f32 %v264_v24 }
 0x27e   : > { %v435_v25 = vpop.eup %434 }
 0x27f   : > { %v267_v26 = vmul.f32 %v435_v25, %v384_v22 }
 0x281   : > { %v268_v27 = vsub.f32 %v267_v26, %v254_v17 }
 0x283   : > { %v270_v28 = vmul.f32 %v268_v27, %v268_v27 }
 0x285   : > { %v271_v29 = vsel %vm242_vm1, %v270_v28, 0.0 }
 0x286   : > { %v272_v30 = vrot.slane %v271_v29, 4 }
 0x288   : > { %v273_v31 = vadd.f32 %v272_v30, %v271_v29 }
 0x28a   : > { %v274_v32 = vrot.slane %v273_v31, 2 }
 0x28c   : > { %v275_v33 = vadd.f32 %v274_v32, %v273_v31 }
 0x28e   : > { %v276_v34 = vrot.slane %v275_v33, 1 }
 0x290   : > { %v277_v36 = vadd.f32 %v276_v34, %v275_v33  ;;  %284 = sbr.rel (%p385_p8) target bundleno = 810 (0x32a), region = 36 }
 0x292   : > { %v278_v37 = vadd.f32 %v277_v36, %v269_v35 }
 0x294   : > { %280 = vst.msk [vmem:[#allocation2] sm:$0x1] %vm279_vm4, %v278_v37 }
 0x295   : > { %vm290_vm5 = vcmask 0  }
 0x29b   : > { %v285_v38 = vld [vmem:[#allocation2] sm:$0x1] }
 0x29c   : > { %v286_v39 = vsel %vm279_vm4, %v285_v38, 0.0 }
 0x29d   : > { %287 = vadd.xlane.f32.xlu0 %v286_v39 }
 0x326   : > { %v288_v40 = vpop.xlane.xlu0 %287 }
 0x327   : > { %v289_v41 = vmul.f32 0.5, %v288_v40 }
 0x329   : > { %291 = vst.msk [vmem:[%s221_s21] sm:$0x1] %vm290_vm5, %v289_v41 }
 0x32a PF: > { %s12_s13 = sadd.s32 1, %s474_s13   ;;  %s568_s9 = smov %s466_s11 }
 0x32b   : > { %p9_p9 = scmp.ge.s32.totalorder %s12_s13, 10   ;;  %s569_s10 = smov %s470_s12 }
 0x32c   : > { %s570_s11 = smov %s573_s14  ;;  %s571_s12 = smov %s577_s15 }
 0x32d   :  { %11 = sbr.rel (!%p9_p9) target bundleno = 3 (0x3), region = 69 }

</bundles_post_ra>
